<compile_context>
chip_gen: v7x
topology: tpu7x:2x2x1
jax: 0.10.0
libtpu: 0.0.40
codegen_flags: <defaults>
</compile_context>

<pallas_src>
import math
import functools

import jax
import jax.numpy as jnp
from jax import lax
from jax.experimental import pallas as pl
from jax.experimental.pallas import tpu as pltpu

_MIB = 1024 * 1024


def _round_up(n, m):
    return ((n + m - 1) // m) * m


# ----------------------------------------------------------------------------
# Hardware / tiling helpers
# ----------------------------------------------------------------------------
def _vmem_capacity_bytes():
    try:
        info = pltpu.get_tpu_info()
        for name in ("vmem_capacity_bytes", "vmem_bytes", "vmem_capacity"):
            v = getattr(info, name, None)
            if v:
                return int(v)
    except Exception:
        pass
    return 64 * _MIB  # conservative (v7x-sized) default


def _vmem_budget():
    cap = _vmem_capacity_bytes()
    # Never request the entire physical VMEM (v7x: ~48 MiB, v5e/v6e: ~112 MiB).
    limit = max(32 * _MIB, cap - 16 * _MIB)
    return cap, limit


def _row_tiles(M, target):
    """Row tile (multiple of 8) minimizing padding; >=2 tiles when M > 8 so the
    'parallel' grid axis can shard across both TensorCores on v7x."""
    if M <= 8:
        return 8, _round_up(max(M, 1), 8)
    n = max(2, -(-M // target))          # cdiv, at least two tiles
    tm = _round_up(-(-M // n), 8)
    return tm, _round_up(M, tm)


def _fit_rows(M, target, per_row_bytes, budget):
    tm, _ = _row_tiles(M, target)
    while tm > 8 and tm * per_row_bytes > budget:
        tm = max(8, _round_up(tm // 2, 8))
    return tm, _round_up(M, tm)


def _ffn_plan(M, Dp, Hp, itemsize, has_res, do_ln, tile_m=None):
    cap, limit = _vmem_budget()
    budget = int(0.85 * limit)
    if tile_m is None:
        tile_m = 1024 if cap >= 96 * _MIB else 512   # v5e/v6e vs v7x targets

    def need(tm_, th_):
        b = 2 * tm_ * Dp * itemsize                  # x blocks (double-buffered)
        if has_res:
            b += 2 * tm_ * Dp * itemsize             # residual / upsample stream
        if do_ln:
            b += 4 * Dp * itemsize                   # gamma + beta
        b += 4 * Dp * th_ * itemsize                 # w1, w2 (x2 buffers each)
        b += 2 * (th_ + Dp) * itemsize               # b1, b2
        b += 2 * tm_ * Dp * itemsize                 # output blocks
        if th_ < Hp:
            b += tm_ * Dp * 4                        # f32 accumulator scratch
        return b

    tm0, _ = _row_tiles(M, tile_m)

    # Preferred plan: full hidden dim per step -> constant weight index_map,
    # weights fetched from HBM once per call (not once per M tile).
    tm = tm0
    while tm > 128 and need(tm, Hp) > budget:
        tm = max(128, _round_up(tm // 2, 8))
    if need(tm, Hp) <= budget:
        th = Hp
    else:
        # Weights too large for VMEM: keep big row tiles, stream hidden chunks.
        tm, th = tm0, 128
        nh_total = Hp // 128
        for d in range(1, nh_total + 1):
            if nh_total % d:
                continue
            cand = Hp // d
            if need(tm, cand) <= budget:
                th = cand
                break
    Mp = _round_up(M, tm)
    vmem_limit = int(min(limit, max(32 * _MIB, 2 * need(tm, th) + 8 * _MIB)))
    return tm, Mp, th, vmem_limit


# ----------------------------------------------------------------------------
# Shared in-kernel math
# ----------------------------------------------------------------------------
def _ln_stats(xf, true_dim, eps):
    """Mean / rstd over the last axis.  Two-pass variance (E[(x-mean)^2]) for
    numerical robustness; padded feature columns are masked out."""
    inv_d = 1.0 / float(true_dim)
    mean = jnp.sum(xf, axis=-1, keepdims=True) * inv_d
    col = lax.broadcasted_iota(jnp.int32, xf.shape, xf.ndim - 1)
    cen = jnp.where(col < true_dim, xf - mean, 0.0)
    var = jnp.sum(cen * cen, axis=-1, keepdims=True) * inv_d
    return mean, lax.rsqrt(var + eps)


def _gelu(h, approx):
    if approx:
        # tanh approximation lowers to the EUP (its own VLIW slot); slightly
        # deviates from PyTorch's exact erf GELU.
        c = math.sqrt(2.0 / math.pi)
        return 0.5 * h * (1.0 + jnp.tanh(c * (h + 0.044715 * h * h * h)))
    return 0.5 * h * (1.0 + lax.erf(h * (1.0 / math.sqrt(2.0))))


# ----------------------------------------------------------------------------
# Fused LayerNorm + nearest downsample (d_model % num_tokens == 0 path)
# ----------------------------------------------------------------------------
def _ln_gather_kernel(x_ref, xs_ref, gs_ref, bs_ref, o_ref, *, true_dim, eps):
    xf = x_ref[...].astype(jnp.float32)
    mean, rstd = _ln_stats(xf, true_dim, eps)
    y = (xs_ref[...].astype(jnp.float32) - mean) * rstd
    y = y * gs_ref[...].astype(jnp.float32) + bs_ref[...].astype(jnp.float32)
    o_ref[...] = y.astype(o_ref.dtype)


def ln_downsample_pallas(x3d, gamma_sel, beta_sel, *, num_tokens, eps=1e-5,
                         tile_m=512):
    """LayerNorm(x) followed by nearest-neighbour 1/num_tokens downsample on
    the flattened (tokens*features) axis, emitting only the gathered (B, D)
    elements.  Requires d_model % num_tokens == 0."""
    B, T, D = x3d.shape
    r = D // num_tokens
    M = B * T
    itemsize = jnp.dtype(x3d.dtype).itemsize
    Dp = _round_up(D, 128)
    Rp = gamma_sel.shape[-1]

    _, limit = _vmem_budget()
    per_row = 2 * itemsize * (Dp + 2 * Rp) + 4 * Dp
    tm, Mp = _fit_rows(M, tile_m, per_row, int(0.7 * limit))
    vmem_limit = int(min(limit, max(32 * _MIB, 2 * tm * per_row + 8 * _MIB)))

    x2d = x3d.reshape(M, D)
    xs2d = x3d[:, :, ::num_tokens].reshape(M, r)   # raw columns the gather uses
    xp = jnp.pad(x2d, ((0, Mp - M), (0, Dp - D)))
    xsp = jnp.pad(xs2d, ((0, Mp - M), (0, Rp - r)))

    out = pl.pallas_call(
        functools.partial(_ln_gather_kernel, true_dim=D, eps=eps),
        out_shape=jax.ShapeDtypeStruct((Mp, Rp), x3d.dtype),
        grid_spec=pltpu.PrefetchScalarGridSpec(
            num_scalar_prefetch=0,
            grid=(Mp // tm,),
            in_specs=[
                pl.BlockSpec((tm, Dp), lambda i: (i, 0)),
                pl.BlockSpec((tm, Rp), lambda i: (i, 0)),
                pl.BlockSpec((1, Rp), lambda i: (0, 0)),
                pl.BlockSpec((1, Rp), lambda i: (0, 0)),
            ],
            out_specs=pl.BlockSpec((tm, Rp), lambda i: (i, 0)),
        ),
        compiler_params=pltpu.CompilerParams(
            dimension_semantics=("parallel",),
            vmem_limit_bytes=vmem_limit,
        ),
    )(xp, xsp, gamma_sel, beta_sel)
    return out[:M, :r].reshape(B, T * r)            # == (B, D)


# ----------------------------------------------------------------------------
# Standalone LayerNorm (fallback when d_model % num_tokens != 0)
# ----------------------------------------------------------------------------
def _ln_kernel(x_ref, g_ref, b_ref, o_ref, *, true_dim, eps):
    xf = x_ref[...].astype(jnp.float32)
    mean, rstd = _ln_stats(xf, true_dim, eps)
    y = (xf - mean) * rstd
    y = y * g_ref[...].astype(jnp.float32) + b_ref[...].astype(jnp.float32)
    o_ref[...] = y.astype(o_ref.dtype)


def layernorm_pallas(x2d, gamma_p, beta_p, *, true_dim, eps=1e-5, tile_m=512):
    M, D = x2d.shape
    Dp = gamma_p.shape[-1]
    itemsize = jnp.dtype(x2d.dtype).itemsize
    _, limit = _vmem_budget()
    per_row = 4 * itemsize * Dp + 4 * Dp
    tm, Mp = _fit_rows(M, tile_m, per_row, int(0.7 * limit))
    vmem_limit = int(min(limit, max(32 * _MIB, 2 * tm * per_row + 8 * _MIB)))
    xp = jnp.pad(x2d, ((0, Mp - M), (0, Dp - D)))

    out = pl.pallas_call(
        functools.partial(_ln_kernel, true_dim=true_dim, eps=eps),
        out_shape=jax.ShapeDtypeStruct((Mp, Dp), x2d.dtype),
        grid_spec=pltpu.PrefetchScalarGridSpec(
            num_scalar_prefetch=0,
            grid=(Mp // tm,),
            in_specs=[
                pl.BlockSpec((tm, Dp), lambda i: (i, 0)),
                pl.BlockSpec((1, Dp), lambda i: (0, 0)),
                pl.BlockSpec((1, Dp), lambda i: (0, 0)),
            ],
            out_specs=pl.BlockSpec((tm, Dp), lambda i: (i, 0)),
        ),
        compiler_params=pltpu.CompilerParams(
            dimension_semantics=("parallel",),
            vmem_limit_bytes=vmem_limit,
        ),
    )(xp, gamma_p, beta_p)
    return out[:M, :true_dim]


# ----------------------------------------------------------------------------
# Fused [x (+ res stream)] -> [optional LN] -> Linear -> GELU -> Linear
# -> [optional +residual].  Grid: (M tiles [parallel], hidden tiles [arbitrary])
# ----------------------------------------------------------------------------
def _ffn_kernel(*refs, do_ln, add_residual, has_res, multi_k, true_dim, eps,
                gelu_approx):
    if multi_k:
        refs, acc_ref = refs[:-1], refs[-1]
    else:
        acc_ref = None
    idx = 0
    x_ref = refs[idx]; idx += 1
    r_ref = None
    if has_res:
        r_ref = refs[idx]; idx += 1
    g_ref = b_ref = None
    if do_ln:
        g_ref, b_ref = refs[idx], refs[idx + 1]; idx += 2
    w1_ref, b1_ref, w2_ref, b2_ref, o_ref = refs[idx:idx + 5]

    x = x_ref[...]
    if has_res:
        x = x + r_ref[...]                     # x1 = x + upsample (never in HBM)

    if do_ln:
        xf = x.astype(jnp.float32)
        mean, rstd = _ln_stats(xf, true_dim, eps)
        xn = (xf - mean) * rstd
        xn = xn * g_ref[...].astype(jnp.float32) + b_ref[...].astype(jnp.float32)
        x_in = xn.astype(w1_ref.dtype)         # native dtype for the MXU
    else:
        x_in = x.astype(w1_ref.dtype)

    h = jnp.dot(x_in, w1_ref[...], preferred_element_type=jnp.float32)
    h = h + b1_ref[...].astype(jnp.float32)
    h = _gelu(h, gelu_approx)
    # (Dropout layers are identity in eval mode.)
    y = jnp.dot(h.astype(w2_ref.dtype), w2_ref[...],
                preferred_element_type=jnp.float32)

    if multi_k:
        k = pl.program_id(1)

        @pl.when(k == 0)
        def _init():
            acc_ref[...] = jnp.zeros_like(acc_ref)

        acc_ref[...] += y

        @pl.when(k == pl.num_programs(1) - 1)
        def _finish():
            out = acc_ref[...] + b2_ref[...].astype(jnp.float32)
            if add_residual:
                out = out + x.astype(jnp.float32)
            o_ref[...] = out.astype(o_ref.dtype)
    else:
        out = y + b2_ref[...].astype(jnp.float32)
        if add_residual:
            out = out + x.astype(jnp.float32)
        o_ref[...] = out.astype(o_ref.dtype)


def ffn_pallas(x2d, w1p, b1p, w2p, b2p, *, gamma_p=None, beta_p=None,
               res2d=None, true_dim, add_residual, eps=1e-5, tile_m=None,
               gelu_approx=False):
    """x2d: (M, D) unpadded.  w1p/b1p/w2p/b2p (and gamma_p/beta_p) pre-padded to
    lane-dense 128-multiples.  res2d (optional): second streamed input added to
    x inside the kernel before the LayerNorm and as the residual."""
    M, D = x2d.shape
    Dp, Hp = w1p.shape
    itemsize = jnp.dtype(x2d.dtype).itemsize
    do_ln = gamma_p is not None
    has_res = res2d is not None

    tm, Mp, th, vmem_limit = _ffn_plan(M, Dp, Hp, itemsize, has_res, do_ln,
                                       tile_m)
    nh = Hp // th
    multi_k = nh > 1
    n_m = Mp // tm

    xp = jnp.pad(x2d, ((0, Mp - M), (0, Dp - D)))
    args = [xp]
    in_specs = [pl.BlockSpec((tm, Dp), lambda i, k: (i, 0))]
    if has_res:
        args.append(jnp.pad(res2d, ((0, Mp - M), (0, Dp - D))))
        in_specs.append(pl.BlockSpec((tm, Dp), lambda i, k: (i, 0)))
    if do_ln:
        args += [gamma_p, beta_p]
        in_specs += [pl.BlockSpec((1, Dp), lambda i, k: (0, 0)),
                     pl.BlockSpec((1, Dp), lambda i, k: (0, 0))]
    args += [w1p, b1p, w2p, b2p]
    in_specs += [
        pl.BlockSpec((Dp, th), lambda i, k: (0, k)),   # w1 chunk (constant if nh==1)
        pl.BlockSpec((1, th), lambda i, k: (0, k)),
        pl.BlockSpec((th, Dp), lambda i, k: (k, 0)),   # w2 chunk
        pl.BlockSpec((1, Dp), lambda i, k: (0, 0)),
    ]

    scratch = []
    if multi_k:
        scratch.append(pltpu.VMEM((tm, Dp), jnp.float32))

    weight_fetches = n_m if multi_k else 1
    cost = pl.CostEstimate(
        flops=4 * Mp * Dp * Hp,
        transcendentals=Mp * Hp,
        bytes_accessed=itemsize * (Mp * Dp * (2 + int(has_res))
                                   + weight_fetches * 2 * Dp * Hp + Hp + Dp),
    )

    out = pl.pallas_call(
        functools.partial(_ffn_kernel, do_ln=do_ln, add_residual=add_residual,
                          has_res=has_res, multi_k=multi_k, true_dim=true_dim,
                          eps=eps, gelu_approx=gelu_approx),
        out_shape=jax.ShapeDtypeStruct((Mp, Dp), x2d.dtype),
        grid_spec=pltpu.PrefetchScalarGridSpec(
            num_scalar_prefetch=0,
            grid=(n_m, nh),
            in_specs=in_specs,
            out_specs=pl.BlockSpec((tm, Dp), lambda i, k: (i, 0)),
            scratch_shapes=scratch,
        ),
        compiler_params=pltpu.CompilerParams(
            dimension_semantics=("parallel", "arbitrary"),
            vmem_limit_bytes=vmem_limit,
        ),
        cost_estimate=cost,
    )(*args)
    return out[:M, :D]


# ----------------------------------------------------------------------------
# Parameter preparation (pad / cast ONCE, outside the jitted forward)
# ----------------------------------------------------------------------------
def prepare_params(raw, *, d_model, num_tokens, param_dtype=None):
    def cast(a):
        return a if param_dtype is None else a.astype(param_dtype)

    def pad_w(w):
        i, o = w.shape
        return jnp.pad(cast(w), ((0, _round_up(i, 128) - i),
                                 (0, _round_up(o, 128) - o)))

    def pad_b(b):
        (o,) = b.shape
        return jnp.pad(cast(b).reshape(1, o),
                       ((0, 0), (0, _round_up(o, 128) - o)))

    out = {
        "ctx_w1": pad_w(raw["ctx_w1"]), "ctx_b1": pad_b(raw["ctx_b1"]),
        "ctx_w2": pad_w(raw["ctx_w2"]), "ctx_b2": pad_b(raw["ctx_b2"]),
        "mlp_w1": pad_w(raw["mlp_w1"]), "mlp_b1": pad_b(raw["mlp_b1"]),
        "mlp_w2": pad_w(raw["mlp_w2"]), "mlp_b2": pad_b(raw["mlp_b2"]),
        "ln_gamma": pad_b(raw["ln_gamma"]), "ln_beta": pad_b(raw["ln_beta"]),
    }
    if d_model % num_tokens == 0:
        sel = slice(0, d_model, num_tokens)     # features the downsample reads
        out["ln_gamma_ds"] = pad_b(raw["ln_gamma"][sel])
        out["ln_beta_ds"] = pad_b(raw["ln_beta"][sel])
    return out


# ----------------------------------------------------------------------------
# Full ContextualizerBlock forward
# ----------------------------------------------------------------------------
@functools.partial(jax.jit, static_argnames=("num_tokens",))
def contextualizer_block(x, params, *, num_tokens):
    B, T, D = x.shape
    assert T == num_tokens

    # --- stage 1: LayerNorm fused with the nearest-neighbour downsample ---
    if D % num_tokens == 0:
        ctx = ln_downsample_pallas(x, params["ln_gamma_ds"],
                                   params["ln_beta_ds"], num_tokens=num_tokens)
    else:
        y = layernorm_pallas(x.reshape(B * T, D), params["ln_gamma"],
                             params["ln_beta"], true_dim=D)
        ctx = y.reshape(B, T * D)[:, ::num_tokens]

    # --- stage 2: context FeedForward (no LN, no residual) ---
    ctx = ffn_pallas(ctx, params["ctx_w1"], params["ctx_b1"],
                     params["ctx_w2"], params["ctx_b2"],
                     true_dim=D, add_residual=False)

    # --- stage 3: nn.Upsample(scale=T, nearest): out[j] = ctx[j // T] ---
    up = jnp.repeat(ctx, num_tokens, axis=1).reshape(B, T, D)

    # --- stage 4: fused (x + up) -> LayerNorm -> FFN -> + (x + up) ---
    out = ffn_pallas(x.reshape(B * T, D),
                     params["mlp_w1"], params["mlp_b1"],
                     params["mlp_w2"], params["mlp_b2"],
                     gamma_p=params["ln_gamma"], beta_p=params["ln_beta"],
                     res2d=up.reshape(B * T, D),
                     true_dim=D, add_residual=True)
    return out.reshape(B, T, D)


# ----------------------------------------------------------------------------
# Pure-JAX reference (mirrors the PyTorch forward exactly; eval-mode dropout)
# ----------------------------------------------------------------------------
def _reference(x, p, num_tokens, eps=1e-5):
    def ln(v):
        mu = jnp.mean(v, axis=-1, keepdims=True)
        var = jnp.mean((v - mu) ** 2, axis=-1, keepdims=True)
        return (v - mu) / jnp.sqrt(var + eps) * p["ln_gamma"] + p["ln_beta"]

    def ffn(v, w1, b1, w2, b2):
        h = v @ w1 + b1
        h = 0.5 * h * (1.0 + lax.erf(h / jnp.sqrt(2.0)))
        return h @ w2 + b2

    B, T, D = x.shape
    y = ln(x)
    ctx = y.reshape(B, T * D)[:, ::num_tokens]
    ctx = ffn(ctx, p["ctx_w1"], p["ctx_b1"], p["ctx_w2"], p["ctx_b2"])
    up = jnp.repeat(ctx, num_tokens, axis=1).reshape(B, T, D)
    x1 = up + x
    out = ffn(ln(x1), p["mlp_w1"], p["mlp_b1"], p["mlp_w2"], p["mlp_b2"]) + x1
    return out


if __name__ == "__main__":
    batch, num_tokens, d_model, d_ffn = 2, 8, 32, 64

    key = jax.random.PRNGKey(0)
    ks = jax.random.split(key, 11)
    x = jax.random.normal(ks[0], (batch, num_tokens, d_model), jnp.float32)

    def linear_init(kw, kb, fan_in, fan_out):
        w = jax.random.normal(kw, (fan_in, fan_out), jnp.float32) / math.sqrt(fan_in)
        b = jax.random.normal(kb, (fan_out,), jnp.float32) * 0.01
        return w, b

    cw1, cb1 = linear_init(ks[1], ks[2], d_model, d_ffn)
    cw2, cb2 = linear_init(ks[3], ks[4], d_ffn, d_model)
    mw1, mb1 = linear_init(ks[5], ks[6], d_model, d_ffn)
    mw2, mb2 = linear_init(ks[7], ks[8], d_ffn, d_model)
    gamma = 1.0 + 0.05 * jax.random.normal(ks[9], (d_model,), jnp.float32)
    beta = 0.05 * jax.random.normal(ks[10], (d_model,), jnp.float32)

    raw = dict(ln_gamma=gamma, ln_beta=beta,
               ctx_w1=cw1, ctx_b1=cb1, ctx_w2=cw2, ctx_b2=cb2,
               mlp_w1=mw1, mlp_b1=mb1, mlp_w2=mw2, mlp_b2=mb2)

    prepared = prepare_params(raw, d_model=d_model, num_tokens=num_tokens)

    out = contextualizer_block(x, prepared, num_tokens=num_tokens)
    out = jax.block_until_ready(out)

    ref = _reference(x, raw, num_tokens)
    assert out.shape == x.shape
    err = float(jnp.max(jnp.abs(out - ref)))
    assert jnp.allclose(out, ref, atol=2e-4, rtol=2e-4), (
        f"mismatch vs reference, max abs err {err}")

    print("KERNEL_OK")
</pallas_src>

<mosaic_0001>
module attributes {stable_mosaic.version = 11 : i64} {
  func.func @_ln_gather_kernel(%arg0: i32, %arg1: memref<8x128xf32, #tpu.memory_space<vmem>>, %arg2: memref<8x128xf32, #tpu.memory_space<vmem>>, %arg3: memref<1x128xf32, #tpu.memory_space<vmem>>, %arg4: memref<1x128xf32, #tpu.memory_space<vmem>>, %arg5: memref<8x128xf32, #tpu.memory_space<vmem>>) attributes {dimension_semantics = [#tpu.dimension_semantics<parallel>], iteration_bounds = array<i64: 2>, scalar_prefetch = 0 : i64, scratch_operands = 0 : i64, tpu.core_type = #tpu.core_type<tc>, window_params = [{transform_indices = @transform_0, window_bounds = array<i64: 8, 128>}, {transform_indices = @transform_1, window_bounds = array<i64: 8, 128>}, {pipeline_mode = #tpu.pipeline_mode<synchronous>, transform_indices = @transform_2, window_bounds = array<i64: 1, 128>}, {pipeline_mode = #tpu.pipeline_mode<synchronous>, transform_indices = @transform_3, window_bounds = array<i64: 1, 128>}, {transform_indices = @transform_4, window_bounds = array<i64: 8, 128>}]} {
    %c0 = arith.constant 0 : index
    %c0_0 = arith.constant 0 : index
    %0 = vector.load %arg1[%c0, %c0_0] : memref<8x128xf32, #tpu.memory_space<vmem>>, vector<8x128xf32>
    %cst = arith.constant dense<0.000000e+00> : vector<8xf32>
    %1 = vector.multi_reduction <add>, %0, %cst [1] : vector<8x128xf32> to vector<8xf32>
    %2 = vector.shape_cast %1 : vector<8xf32> to vector<8x1xf32>
    %cst_1 = arith.constant 3.125000e-02 : f32
    %3 = vector.broadcast %cst_1 : f32 to vector<8x1xf32>
    %4 = arith.mulf %2, %3 : vector<8x1xf32>
    %5 = tpu.iota {dimensions = array<i32: 1>} : vector<8x128xi32>
    %c32_i32 = arith.constant 32 : i32
    %6 = vector.broadcast %c32_i32 : i32 to vector<8x128xi32>
    %7 = arith.cmpi slt, %5, %6 : vector<8x128xi32>
    %8 = vector.broadcast %4 : vector<8x1xf32> to vector<8x128xf32>
    %9 = arith.subf %0, %8 : vector<8x128xf32>
    %cst_2 = arith.constant 0.000000e+00 : f32
    %10 = vector.broadcast %cst_2 : f32 to vector<8x128xf32>
    %11 = arith.select %7, %9, %10 : vector<8x128xi1>, vector<8x128xf32>
    %12 = arith.mulf %11, %11 : vector<8x128xf32>
    %cst_3 = arith.constant dense<0.000000e+00> : vector<8xf32>
    %13 = vector.multi_reduction <add>, %12, %cst_3 [1] : vector<8x128xf32> to vector<8xf32>
    %14 = vector.shape_cast %13 : vector<8xf32> to vector<8x1xf32>
    %cst_4 = arith.constant 3.125000e-02 : f32
    %15 = vector.broadcast %cst_4 : f32 to vector<8x1xf32>
    %16 = arith.mulf %14, %15 : vector<8x1xf32>
    %cst_5 = arith.constant 9.99999974E-6 : f32
    %17 = vector.broadcast %cst_5 : f32 to vector<8x1xf32>
    %18 = arith.addf %16, %17 : vector<8x1xf32>
    %19 = math.rsqrt %18 : vector<8x1xf32>
    %c0_6 = arith.constant 0 : index
    %c0_7 = arith.constant 0 : index
    %20 = vector.load %arg2[%c0_6, %c0_7] : memref<8x128xf32, #tpu.memory_space<vmem>>, vector<8x128xf32>
    %21 = vector.broadcast %4 : vector<8x1xf32> to vector<8x128xf32>
    %22 = arith.subf %20, %21 : vector<8x128xf32>
    %23 = vector.broadcast %19 : vector<8x1xf32> to vector<8x128xf32>
    %24 = arith.mulf %22, %23 : vector<8x128xf32>
    %c0_8 = arith.constant 0 : index
    %c0_9 = arith.constant 0 : index
    %25 = vector.load %arg3[%c0_8, %c0_9] : memref<1x128xf32, #tpu.memory_space<vmem>>, vector<1x128xf32>
    %26 = vector.broadcast %25 : vector<1x128xf32> to vector<8x128xf32>
    %27 = arith.mulf %24, %26 : vector<8x128xf32>
    %c0_10 = arith.constant 0 : index
    %c0_11 = arith.constant 0 : index
    %28 = vector.load %arg4[%c0_10, %c0_11] : memref<1x128xf32, #tpu.memory_space<vmem>>, vector<1x128xf32>
    %29 = vector.broadcast %28 : vector<1x128xf32> to vector<8x128xf32>
    %30 = arith.addf %27, %29 : vector<8x128xf32>
    %c0_12 = arith.constant 0 : index
    %c0_13 = arith.constant 0 : index
    %31 = vector.load %arg5[%c0_12, %c0_13] : memref<8x128xf32, #tpu.memory_space<vmem>>, vector<8x128xf32>
    tpu.vector_store %arg5[%c0_12, %c0_13], %30 {strides = array<i32>} : memref<8x128xf32, #tpu.memory_space<vmem>>, vector<8x128xf32>,
    return
  }
  func.func @transform_0(%arg0: i32) -> (i32, i32) {
    %c0_i32 = arith.constant 0 : i32
    %c0_i32_0 = arith.constant 0 : i32
    return %arg0, %c0_i32 : i32, i32
  }
  func.func @transform_1(%arg0: i32) -> (i32, i32) {
    %c0_i32 = arith.constant 0 : i32
    %c0_i32_0 = arith.constant 0 : i32
    return %arg0, %c0_i32 : i32, i32
  }
  func.func @transform_2(%arg0: i32) -> (i32, i32) {
    %c0_i32 = arith.constant 0 : i32
    %c0_i32_0 = arith.constant 0 : i32
    %c0_i32_1 = arith.constant 0 : i32
    return %c0_i32, %c0_i32_0 : i32, i32
  }
  func.func @transform_3(%arg0: i32) -> (i32, i32) {
    %c0_i32 = arith.constant 0 : i32
    %c0_i32_0 = arith.constant 0 : i32
    %c0_i32_1 = arith.constant 0 : i32
    return %c0_i32, %c0_i32_0 : i32, i32
  }
  func.func @transform_4(%arg0: i32) -> (i32, i32) {
    %c0_i32 = arith.constant 0 : i32
    %c0_i32_0 = arith.constant 0 : i32
    return %arg0, %c0_i32 : i32, i32
  }
}

module attributes {stable_mosaic.version = 11 : i64} {
  func.func @_ffn_kernel(%arg0: i32, %arg1: i32, %arg2: memref<8x128xf32, #tpu.memory_space<vmem>>, %arg3: memref<128x128xf32, #tpu.memory_space<vmem>>, %arg4: memref<1x128xf32, #tpu.memory_space<vmem>>, %arg5: memref<128x128xf32, #tpu.memory_space<vmem>>, %arg6: memref<1x128xf32, #tpu.memory_space<vmem>>, %arg7: memref<8x128xf32, #tpu.memory_space<vmem>>) attributes {dimension_semantics = [#tpu.dimension_semantics<parallel>, #tpu.dimension_semantics<arbitrary>], iteration_bounds = array<i64: 1, 1>, scalar_prefetch = 0 : i64, scratch_operands = 0 : i64, tpu.core_type = #tpu.core_type<tc>, window_params = [{transform_indices = @transform_0, window_bounds = array<i64: 8, 128>}, {transform_indices = @transform_1, window_bounds = array<i64: 128, 128>}, {transform_indices = @transform_2, window_bounds = array<i64: 1, 128>}, {transform_indices = @transform_3, window_bounds = array<i64: 128, 128>}, {pipeline_mode = #tpu.pipeline_mode<synchronous>, transform_indices = @transform_4, window_bounds = array<i64: 1, 128>}, {transform_indices = @transform_5, window_bounds = array<i64: 8, 128>}]} {
    %c0 = arith.constant 0 : index
    %c0_0 = arith.constant 0 : index
    %0 = vector.load %arg2[%c0, %c0_0] : memref<8x128xf32, #tpu.memory_space<vmem>>, vector<8x128xf32>
    %c0_1 = arith.constant 0 : index
    %c0_2 = arith.constant 0 : index
    %1 = vector.load %arg3[%c0_1, %c0_2] : memref<128x128xf32, #tpu.memory_space<vmem>>, vector<128x128xf32>
    %cst = arith.constant dense<0.000000e+00> : vector<8x128xf32>
    %2 = tpu.matmul %0, %1, %cst {dimension_numbers = #tpu.dot_dimension_numbers<[1], [0], [0], [1], [0, 0, 1, 1], [], []>} : vector<8x128xf32>, vector<128x128xf32>, vector<8x128xf32> -> vector<8x128xf32>
    %c0_3 = arith.constant 0 : index
    %c0_4 = arith.constant 0 : index
    %3 = vector.load %arg4[%c0_3, %c0_4] : memref<1x128xf32, #tpu.memory_space<vmem>>, vector<1x128xf32>
    %4 = vector.broadcast %3 : vector<1x128xf32> to vector<8x128xf32>
    %5 = arith.addf %2, %4 : vector<8x128xf32>
    %cst_5 = arith.constant 5.000000e-01 : f32
    %6 = vector.broadcast %cst_5 : f32 to vector<8x128xf32>
    %7 = arith.mulf %6, %5 : vector<8x128xf32>
    %cst_6 = arith.constant 0.707106769 : f32
    %8 = vector.broadcast %cst_6 : f32 to vector<8x128xf32>
    %9 = arith.mulf %5, %8 : vector<8x128xf32>
    %10 = math.erf %9 : vector<8x128xf32>
    %cst_7 = arith.constant 1.000000e+00 : f32
    %11 = vector.broadcast %cst_7 : f32 to vector<8x128xf32>
    %12 = arith.addf %11, %10 : vector<8x128xf32>
    %13 = arith.mulf %7, %12 : vector<8x128xf32>
    %c0_8 = arith.constant 0 : index
    %c0_9 = arith.constant 0 : index
    %14 = vector.load %arg5[%c0_8, %c0_9] : memref<128x128xf32, #tpu.memory_space<vmem>>, vector<128x128xf32>
    %cst_10 = arith.constant dense<0.000000e+00> : vector<8x128xf32>
    %15 = tpu.matmul %13, %14, %cst_10 {dimension_numbers = #tpu.dot_dimension_numbers<[1], [0], [0], [1], [0, 0, 1, 1], [], []>} : vector<8x128xf32>, vector<128x128xf32>, vector<8x128xf32> -> vector<8x128xf32>
    %c0_11 = arith.constant 0 : index
    %c0_12 = arith.constant 0 : index
    %16 = vector.load %arg6[%c0_11, %c0_12] : memref<1x128xf32, #tpu.memory_space<vmem>>, vector<1x128xf32>
    %17 = vector.broadcast %16 : vector<1x128xf32> to vector<8x128xf32>
    %18 = arith.addf %15, %17 : vector<8x128xf32>
    %c0_13 = arith.constant 0 : index
    %c0_14 = arith.constant 0 : index
    %19 = vector.load %arg7[%c0_13, %c0_14] : memref<8x128xf32, #tpu.memory_space<vmem>>, vector<8x128xf32>
    tpu.vector_store %arg7[%c0_13, %c0_14], %18 {strides = array<i32>} : memref<8x128xf32, #tpu.memory_space<vmem>>, vector<8x128xf32>,
    return
  }
  func.func @transform_0(%arg0: i32, %arg1: i32) -> (i32, i32) {
    %c0_i32 = arith.constant 0 : i32
    %c0_i32_0 = arith.constant 0 : i32
    return %arg0, %c0_i32 : i32, i32
  }
  func.func @transform_1(%arg0: i32, %arg1: i32) -> (i32, i32) {
    %c0_i32 = arith.constant 0 : i32
    %c0_i32_0 = arith.constant 0 : i32
    return %c0_i32, %arg1 : i32, i32
  }
  func.func @transform_2(%arg0: i32, %arg1: i32) -> (i32, i32) {
    %c0_i32 = arith.constant 0 : i32
    %c0_i32_0 = arith.constant 0 : i32
    return %c0_i32, %arg1 : i32, i32
  }
  func.func @transform_3(%arg0: i32, %arg1: i32) -> (i32, i32) {
    %c0_i32 = arith.constant 0 : i32
    %c0_i32_0 = arith.constant 0 : i32
    return %arg1, %c0_i32 : i32, i32
  }
  func.func @transform_4(%arg0: i32, %arg1: i32) -> (i32, i32) {
    %c0_i32 = arith.constant 0 : i32
    %c0_i32_0 = arith.constant 0 : i32
    %c0_i32_1 = arith.constant 0 : i32
    return %c0_i32, %c0_i32_0 : i32, i32
  }
  func.func @transform_5(%arg0: i32, %arg1: i32) -> (i32, i32) {
    %c0_i32 = arith.constant 0 : i32
    %c0_i32_0 = arith.constant 0 : i32
    return %arg0, %c0_i32 : i32, i32
  }
}

module attributes {stable_mosaic.version = 11 : i64} {
  func.func @_ffn_kernel(%arg0: i32, %arg1: i32, %arg2: memref<8x128xf32, #tpu.memory_space<vmem>>, %arg3: memref<8x128xf32, #tpu.memory_space<vmem>>, %arg4: memref<1x128xf32, #tpu.memory_space<vmem>>, %arg5: memref<1x128xf32, #tpu.memory_space<vmem>>, %arg6: memref<128x128xf32, #tpu.memory_space<vmem>>, %arg7: memref<1x128xf32, #tpu.memory_space<vmem>>, %arg8: memref<128x128xf32, #tpu.memory_space<vmem>>, %arg9: memref<1x128xf32, #tpu.memory_space<vmem>>, %arg10: memref<8x128xf32, #tpu.memory_space<vmem>>) attributes {dimension_semantics = [#tpu.dimension_semantics<parallel>, #tpu.dimension_semantics<arbitrary>], iteration_bounds = array<i64: 2, 1>, scalar_prefetch = 0 : i64, scratch_operands = 0 : i64, tpu.core_type = #tpu.core_type<tc>, window_params = [{transform_indices = @transform_0, window_bounds = array<i64: 8, 128>}, {transform_indices = @transform_1, window_bounds = array<i64: 8, 128>}, {pipeline_mode = #tpu.pipeline_mode<synchronous>, transform_indices = @transform_2, window_bounds = array<i64: 1, 128>}, {pipeline_mode = #tpu.pipeline_mode<synchronous>, transform_indices = @transform_3, window_bounds = array<i64: 1, 128>}, {transform_indices = @transform_4, window_bounds = array<i64: 128, 128>}, {transform_indices = @transform_5, window_bounds = array<i64: 1, 128>}, {transform_indices = @transform_6, window_bounds = array<i64: 128, 128>}, {pipeline_mode = #tpu.pipeline_mode<synchronous>, transform_indices = @transform_7, window_bounds = array<i64: 1, 128>}, {transform_indices = @transform_8, window_bounds = array<i64: 8, 128>}]} {
    %c0 = arith.constant 0 : index
    %c0_0 = arith.constant 0 : index
    %0 = vector.load %arg2[%c0, %c0_0] : memref<8x128xf32, #tpu.memory_space<vmem>>, vector<8x128xf32>
    %c0_1 = arith.constant 0 : index
    %c0_2 = arith.constant 0 : index
    %1 = vector.load %arg3[%c0_1, %c0_2] : memref<8x128xf32, #tpu.memory_space<vmem>>, vector<8x128xf32>
    %2 = arith.addf %0, %1 : vector<8x128xf32>
    %cst = arith.constant dense<0.000000e+00> : vector<8xf32>
    %3 = vector.multi_reduction <add>, %2, %cst [1] : vector<8x128xf32> to vector<8xf32>
    %4 = vector.shape_cast %3 : vector<8xf32> to vector<8x1xf32>
    %cst_3 = arith.constant 3.125000e-02 : f32
    %5 = vector.broadcast %cst_3 : f32 to vector<8x1xf32>
    %6 = arith.mulf %4, %5 : vector<8x1xf32>
    %7 = tpu.iota {dimensions = array<i32: 1>} : vector<8x128xi32>
    %c32_i32 = arith.constant 32 : i32
    %8 = vector.broadcast %c32_i32 : i32 to vector<8x128xi32>
    %9 = arith.cmpi slt, %7, %8 : vector<8x128xi32>
    %10 = vector.broadcast %6 : vector<8x1xf32> to vector<8x128xf32>
    %11 = arith.subf %2, %10 : vector<8x128xf32>
    %cst_4 = arith.constant 0.000000e+00 : f32
    %12 = vector.broadcast %cst_4 : f32 to vector<8x128xf32>
    %13 = arith.select %9, %11, %12 : vector<8x128xi1>, vector<8x128xf32>
    %14 = arith.mulf %13, %13 : vector<8x128xf32>
    %cst_5 = arith.constant dense<0.000000e+00> : vector<8xf32>
    %15 = vector.multi_reduction <add>, %14, %cst_5 [1] : vector<8x128xf32> to vector<8xf32>
    %16 = vector.shape_cast %15 : vector<8xf32> to vector<8x1xf32>
    %cst_6 = arith.constant 3.125000e-02 : f32
    %17 = vector.broadcast %cst_6 : f32 to vector<8x1xf32>
    %18 = arith.mulf %16, %17 : vector<8x1xf32>
    %cst_7 = arith.constant 9.99999974E-6 : f32
    %19 = vector.broadcast %cst_7 : f32 to vector<8x1xf32>
    %20 = arith.addf %18, %19 : vector<8x1xf32>
    %21 = math.rsqrt %20 : vector<8x1xf32>
    %22 = vector.broadcast %6 : vector<8x1xf32> to vector<8x128xf32>
    %23 = arith.subf %2, %22 : vector<8x128xf32>
    %24 = vector.broadcast %21 : vector<8x1xf32> to vector<8x128xf32>
    %25 = arith.mulf %23, %24 : vector<8x128xf32>
    %c0_8 = arith.constant 0 : index
    %c0_9 = arith.constant 0 : index
    %26 = vector.load %arg4[%c0_8, %c0_9] : memref<1x128xf32, #tpu.memory_space<vmem>>, vector<1x128xf32>
    %27 = vector.broadcast %26 : vector<1x128xf32> to vector<8x128xf32>
    %28 = arith.mulf %25, %27 : vector<8x128xf32>
    %c0_10 = arith.constant 0 : index
    %c0_11 = arith.constant 0 : index
    %29 = vector.load %arg5[%c0_10, %c0_11] : memref<1x128xf32, #tpu.memory_space<vmem>>, vector<1x128xf32>
    %30 = vector.broadcast %29 : vector<1x128xf32> to vector<8x128xf32>
    %31 = arith.addf %28, %30 : vector<8x128xf32>
    %c0_12 = arith.constant 0 : index
    %c0_13 = arith.constant 0 : index
    %32 = vector.load %arg6[%c0_12, %c0_13] : memref<128x128xf32, #tpu.memory_space<vmem>>, vector<128x128xf32>
    %cst_14 = arith.constant dense<0.000000e+00> : vector<8x128xf32>
    %33 = tpu.matmul %31, %32, %cst_14 {dimension_numbers = #tpu.dot_dimension_numbers<[1], [0], [0], [1], [0, 0, 1, 1], [], []>} : vector<8x128xf32>, vector<128x128xf32>, vector<8x128xf32> -> vector<8x128xf32>
    %c0_15 = arith.constant 0 : index
    %c0_16 = arith.constant 0 : index
    %34 = vector.load %arg7[%c0_15, %c0_16] : memref<1x128xf32, #tpu.memory_space<vmem>>, vector<1x128xf32>
    %35 = vector.broadcast %34 : vector<1x128xf32> to vector<8x128xf32>
    %36 = arith.addf %33, %35 : vector<8x128xf32>
    %cst_17 = arith.constant 5.000000e-01 : f32
    %37 = vector.broadcast %cst_17 : f32 to vector<8x128xf32>
    %38 = arith.mulf %37, %36 : vector<8x128xf32>
    %cst_18 = arith.constant 0.707106769 : f32
    %39 = vector.broadcast %cst_18 : f32 to vector<8x128xf32>
    %40 = arith.mulf %36, %39 : vector<8x128xf32>
    %41 = math.erf %40 : vector<8x128xf32>
    %cst_19 = arith.constant 1.000000e+00 : f32
    %42 = vector.broadcast %cst_19 : f32 to vector<8x128xf32>
    %43 = arith.addf %42, %41 : vector<8x128xf32>
    %44 = arith.mulf %38, %43 : vector<8x128xf32>
    %c0_20 = arith.constant 0 : index
    %c0_21 = arith.constant 0 : index
    %45 = vector.load %arg8[%c0_20, %c0_21] : memref<128x128xf32, #tpu.memory_space<vmem>>, vector<128x128xf32>
    %cst_22 = arith.constant dense<0.000000e+00> : vector<8x128xf32>
    %46 = tpu.matmul %44, %45, %cst_22 {dimension_numbers = #tpu.dot_dimension_numbers<[1], [0], [0], [1], [0, 0, 1, 1], [], []>} : vector<8x128xf32>, vector<128x128xf32>, vector<8x128xf32> -> vector<8x128xf32>
    %c0_23 = arith.constant 0 : index
    %c0_24 = arith.constant 0 : index
    %47 = vector.load %arg9[%c0_23, %c0_24] : memref<1x128xf32, #tpu.memory_space<vmem>>, vector<1x128xf32>
    %48 = vector.broadcast %47 : vector<1x128xf32> to vector<8x128xf32>
    %49 = arith.addf %46, %48 : vector<8x128xf32>
    %50 = arith.addf %49, %2 : vector<8x128xf32>
    %c0_25 = arith.constant 0 : index
    %c0_26 = arith.constant 0 : index
    %51 = vector.load %arg10[%c0_25, %c0_26] : memref<8x128xf32, #tpu.memory_space<vmem>>, vector<8x128xf32>
    tpu.vector_store %arg10[%c0_25, %c0_26], %50 {strides = array<i32>} : memref<8x128xf32, #tpu.memory_space<vmem>>, vector<8x128xf32>,
    return
  }
  func.func @transform_0(%arg0: i32, %arg1: i32) -> (i32, i32) {
    %c0_i32 = arith.constant 0 : i32
    %c0_i32_0 = arith.constant 0 : i32
    return %arg0, %c0_i32 : i32, i32
  }
  func.func @transform_1(%arg0: i32, %arg1: i32) -> (i32, i32) {
    %c0_i32 = arith.constant 0 : i32
    %c0_i32_0 = arith.constant 0 : i32
    return %arg0, %c0_i32 : i32, i32
  }
  func.func @transform_2(%arg0: i32, %arg1: i32) -> (i32, i32) {
    %c0_i32 = arith.constant 0 : i32
    %c0_i32_0 = arith.constant 0 : i32
    %c0_i32_1 = arith.constant 0 : i32
    return %c0_i32, %c0_i32_0 : i32, i32
  }
  func.func @transform_3(%arg0: i32, %arg1: i32) -> (i32, i32) {
    %c0_i32 = arith.constant 0 : i32
    %c0_i32_0 = arith.constant 0 : i32
    %c0_i32_1 = arith.constant 0 : i32
    return %c0_i32, %c0_i32_0 : i32, i32
  }
  func.func @transform_4(%arg0: i32, %arg1: i32) -> (i32, i32) {
    %c0_i32 = arith.constant 0 : i32
    %c0_i32_0 = arith.constant 0 : i32
    return %c0_i32, %arg1 : i32, i32
  }
  func.func @transform_5(%arg0: i32, %arg1: i32) -> (i32, i32) {
    %c0_i32 = arith.constant 0 : i32
    %c0_i32_0 = arith.constant 0 : i32
    return %c0_i32, %arg1 : i32, i32
  }
  func.func @transform_6(%arg0: i32, %arg1: i32) -> (i32, i32) {
    %c0_i32 = arith.constant 0 : i32
    %c0_i32_0 = arith.constant 0 : i32
    return %arg1, %c0_i32 : i32, i32
  }
  func.func @transform_7(%arg0: i32, %arg1: i32) -> (i32, i32) {
    %c0_i32 = arith.constant 0 : i32
    %c0_i32_0 = arith.constant 0 : i32
    %c0_i32_1 = arith.constant 0 : i32
    return %c0_i32, %c0_i32_0 : i32, i32
  }
  func.func @transform_8(%arg0: i32, %arg1: i32) -> (i32, i32) {
    %c0_i32 = arith.constant 0 : i32
    %c0_i32_0 = arith.constant 0 : i32
    return %arg0, %c0_i32 : i32, i32
  }
}

</mosaic_0001>

<bundles_post_ra>
// kernel: contextualizer_block.3
= control target key start
LH: loop header
LB: loop body
LE: loop exit
PB: predicated region body
PF: predicated region fallthrough
CT: control target
= control target key end

     0   :  { %s365_s15 = smov 0   ;;  %s391_s0 = inlined_call_operand.vmem [shape: f32[16,128], index: 0, kind: input, shape index: {}]   ;;  %s392_s1 = inlined_call_operand.vmem [shape: f32[16,128], index: 1, kind: input, shape index: {}]   ;;  %s393_s2 = inlined_call_operand.vmem [shape: f32[1,128], index: 2, kind: input, shape index: {}]   ;;  %s394_s3 = inlined_call_operand.vmem [shape: f32[1,128], index: 3, kind: input, shape index: {}]   ;;  %s395_s4 = inlined_call_operand.vmem [shape: f32[16,128], index: 4, kind: output, shape index: {}]  }
   0x1 LB: > { %s310_s16 = sadd.s32 4294967295, %s338_s15   ;;  %p314_p0 = scmp.ge.s32.totalorder %s338_s15, 1  ;;  %s338_s15 = sphi %s365_s15, %s14_s15  }
   0x2   : > { %p170_p1 = scmp.lt.s32.totalorder %s338_s15, 3 }
   0x4   : > { %p171_p2 = pnand %p314_p0, %p170_p1 }
   0x5   : > { %p198_p3 = scmp.lt.s32.totalorder (!%p171_p2), %s310_s16, 1  ;;  %v214_v1 = vlaneseq (!%p171_p2)  ;;  %v318_v14 = vld [vmem:[%s393_s2] ss:$0 sm:$0xff] (!%p171_p2) }
   0x6   : > { %174 = sbr.rel (%p171_p2) target bundleno = 330 (0x14a), region = 36  ;;  %v319_v16 = vld [vmem:[%s394_s3] ss:$0 sm:$0xff] (!%p171_p2) }
   0x7   : > { %v215_v2 = vand.u32 (!%p171_p2), 127, %v214_v1 }
   0x9   : > { %vm216_vm0 = vcmp.lt.s32.totalorder (!%p171_p2), %v215_v2, 32 }
   0xd   : > { %s397_s16 = smov (!%p198_p3, %s310_s16), 1 }
   0xe   : > { %s315_s17 = sshll.u32 %s397_s16, 3 }
   0xf   : > { %s201_s20 = scalar_lea.vmem %s391_s0, %s315_s17  ;;  %s205_s23 = scalar_lea.vmem %s392_s1, %s315_s17 }
  0x10   : > { %v210_v0 = vld [vmem:[%s201_s20] sm:$0xff]  ;;  %s209_s30 = scalar_lea.vmem %s395_s4, %s315_s17 }
  0x11   : > { %211 = vadd.xlane.f32.xlu0 %v210_v0  ;;  %v225_v3 = vld [vmem:[%s205_s23] sm:$0xff] }
  0x9e   : > { %v212_v4 = vpop.xlane.xlu0 %211 }
  0x9f   : > { %v213_v5 = vmul.f32 0.03125, %v212_v4 }
  0xa1   : > { %v217_v6 = vsub.f32 %v210_v0, %v213_v5  ;;  %v226_v7 = vsub.f32 %v225_v3, %v213_v5 }
  0xa3   : > { %v218_v8 = vsel %vm216_vm0, %v217_v6, 0.0 }
  0xa4   : > { %v219_v9 = vmul.f32 %v218_v8, %v218_v8 }
  0xa6   : > { %220 = vadd.xlane.f32.xlu0 %v219_v9 }
 0x133   : > { %v221_v10 = vpop.xlane.xlu0 %220 }
 0x134   : > { %v222_v11 = vmul.f32 0.03125, %v221_v10 }
 0x136   : > { %v223_v12 = vadd.f32 1e-05, %v222_v11 }
 0x138   : > { %330 = vrsqrt.f32 %v223_v12 }
 0x142   : > { %v331_v13 = vpop.eup %330 }
 0x143   : > { %v227_v15 = vmul.f32 %v331_v13, %v226_v7 }
 0x145   : > { %v235_v17 = vmul.f32 %v318_v14, %v227_v15 }
 0x147   : > { %v243_v18 = vadd.f32 %v319_v16, %v235_v17 }
 0x149   : > { %244 = vst [vmem:[%s209_s30] sm:$0xff] %v243_v18 }
 0x14a PF: > { %s14_s15 = sadd.s32 1, %s338_s15  }
 0x14b   : > { %p11_p4 = scmp.ge.s32.totalorder %s14_s15, 4  }
 0x14d   :  { %13 = sbr.rel (!%p11_p4) target bundleno = 1 (0x1), region = 69 }

// kernel: contextualizer_block.4
= control target key start
LH: loop header
LB: loop body
LE: loop exit
PB: predicated region body
PF: predicated region fallthrough
CT: control target
= control target key end

     0   :  { %10 = vsyncpa [#allocation3], 0  ;;  %s418_s18 = smov [#allocation2]   ;;  %s542_s0 = inlined_call_operand.vmem [shape: f32[8,128], index: 0, kind: input, shape index: {}]   ;;  %s543_s1 = inlined_call_operand.vmem [shape: f32[128,128], index: 1, kind: input, shape index: {}]   ;;  %s544_s2 = inlined_call_operand.vmem [shape: f32[1,128], index: 2, kind: input, shape index: {}]   ;;  %s545_s3 = inlined_call_operand.hbm [shape: f32[128,128], index: 3, kind: input, shape index: {}]   ;;  %s546_s4 = inlined_call_operand.vmem [shape: f32[1,128], index: 4, kind: input, shape index: {}]   ;;  %s547_s5 = inlined_call_operand.vmem [shape: f32[8,128], index: 5, kind: output, shape index: {}]  }
   0x1   :  { %s22_s19 = sshll.u32 %s418_s18, 4  ;;  %s394_s22 = scalar_lea.hbm %s545_s3, 2048  ;;  %s23_s19 = int_to_ptr.vmem [resolvable:$true] %s22_s19 }
   0x2   :  { %p395_p0 = scmp.ne.s32.totalorder %s545_s3, %s394_s22  ;;  %p398_p1 = scmp.lt.u32.totalorder %s394_s22, %s545_s3 }
   0x4   :  { %p400_p2 = pnand %p398_p1, %p395_p0 }
   0x6   :  { %403 = shalt.err (!%p400_p2)
}
   0x7   :  { %s404_s27 = scalar_lea.vmem %s23_s19, 2048  ;;  %p409_p4 = scmp.lt.s32.totalorder %s23_s19, %s23_s19 }
   0x8   :  { %p405_p3 = scmp.ne.s32.totalorder %s23_s19, %s404_s27  ;;  %p410_p5 = scmp.lt.s32.totalorder %s404_s27, %s404_s27 }
   0xa   :  { %p411_p6 = por %p410_p5, %p409_p4 }
   0xc   :  { %p412_p7 = pnand %p411_p6, %p405_p3 }
   0xe   :  { %415 = shalt.err (!%p412_p7)
}
   0xf   :  { %s419_s28 = smov 128   ;;  %s420_s29 = smov 8  }
  0x10   :  { %28 = dma.hbm_to_vmem [thread:$0]  %s545_s3, 2048, %s23_s19, [#allocation3], %s419_s28, %s419_s28, %s420_s29  }
  0x11   :  { %416 = dma.done.wait [#allocation3], 2048  }
  0x12   :  { %417 = vsyncadd [#allocation3], 4294965248  ;;  %v421_v0 = vmov 0.0|0.0   ;;  %vm422_vm0 = vmmov 0   ;;  %v423_v1 = vmov 0.0   ;;  %v35_v2 = vld [vmem:[%s543_s1] sm:$0xff] }
  0x13   :  { %338 = vmatprep.subr.bf16.mxu0 %v421_v0  ;;  %300 = vmatprep.mubr.msk.f32.mxu0 %vm422_vm0, %v423_v1  ;;  %v36_v3 = vld [vmem:[%s543_s1 + $0x8] sm:$0xff]  ;;  %v37_v4 = vld [vmem:[%s543_s1 + $0x10] sm:$0xff]  ;;  %v38_v6 = vld [vmem:[%s543_s1 + $0x18] sm:$0xff] }
  0x14   :  { %362 = vmatprep.subr.bf16.mxu1 %v421_v0  ;;  %335 = vmatprep.mubr.msk.f32.mxu1 %vm422_vm0, %v423_v1  ;;  %v339_v5 = vpack.c.bf16 %v36_v3, %v35_v2  ;;  %v342_v7 = vpack.c.bf16 %v38_v6, %v37_v4  ;;  %v39_v8 = vld [vmem:[%s543_s1 + $0x20] sm:$0xff]  ;;  %v40_v9 = vld [vmem:[%s543_s1 + $0x28] sm:$0xff]  ;;  %v135_v12 = vld [vmem:[#allocation2 + $0x10] sm:$0xff] }
  0x15   :  { %v133_v10 = vld [vmem:[#allocation2] sm:$0xff]  ;;  %v134_v11 = vld [vmem:[#allocation2 + $0x8] sm:$0xff]  ;;  %v136_v13 = vld [vmem:[#allocation2 + $0x18] sm:$0xff]  ;;  %v345_v14 = vpack.c.bf16 %v40_v9, %v39_v8 }
  0x16   :  { %340 = vmatpush3.bf16.msra.mxu0 %v339_v5  ;;  %v363_v15 = vpack.c.bf16 %v134_v11, %v133_v10  ;;  %v41_v16 = vld [vmem:[%s543_s1 + $0x30] sm:$0xff]  ;;  %v42_v17 = vld [vmem:[%s543_s1 + $0x38] sm:$0xff]  ;;  %v366_v18 = vpack.c.bf16 %v136_v13, %v135_v12  ;;  %v137_v19 = vld [vmem:[#allocation2 + $0x20] sm:$0xff] }
  0x17   :  { %341 = vmatprep.subr.bf16.mxu0 %v421_v0  ;;  %v138_v20 = vld [vmem:[#allocation2 + $0x28] sm:$0xff]  ;;  %v348_v21 = vpack.c.bf16 %v42_v17, %v41_v16  ;;  %v43_v22 = vld [vmem:[%s543_s1 + $0x40] sm:$0xff]  ;;  %v45_v26 = vld [vmem:[%s543_s1 + $0x50] sm:$0xff] }
  0x18   :  { %364 = vmatpush3.bf16.msra.mxu1 %v363_v15  ;;  %v44_v23 = vld [vmem:[%s543_s1 + $0x48] sm:$0xff]  ;;  %v369_v24 = vpack.c.bf16 %v138_v20, %v137_v19  ;;  %v46_v27 = vld [vmem:[%s543_s1 + $0x58] sm:$0xff]  ;;  %v47_v29 = vld [vmem:[%s543_s1 + $0x60] sm:$0xff] }
  0x19   :  { %365 = vmatprep.subr.bf16.mxu1 %v421_v0  ;;  %v351_v25 = vpack.c.bf16 %v44_v23, %v43_v22  ;;  %v354_v28 = vpack.c.bf16 %v46_v27, %v45_v26  ;;  %v48_v30 = vld [vmem:[%s543_s1 + $0x68] sm:$0xff]  ;;  %v49_v32 = vld [vmem:[%s543_s1 + $0x70] sm:$0xff]  ;;  %v50_v33 = vld [vmem:[%s543_s1 + $0x78] sm:$0xff] }
  0x1a   :  { %343 = vmatpush3.bf16.msra.mxu0 %v342_v7  ;;  %v357_v31 = vpack.c.bf16 %v48_v30, %v47_v29  ;;  %v360_v34 = vpack.c.bf16 %v50_v33, %v49_v32  ;;  %v34_v35 = vld [vmem:[%s542_s0] sm:$0xff]  ;;  %v139_v36 = vld [vmem:[#allocation2 + $0x30] sm:$0xff]  ;;  %v140_v37 = vld [vmem:[#allocation2 + $0x38] sm:$0xff] }
  0x1b   :  { %344 = vmatprep.subr.bf16.mxu0 %v421_v0  ;;  %v372_v38 = vpack.c.bf16 %v140_v37, %v139_v36  ;;  %v141_v39 = vld [vmem:[#allocation2 + $0x40] sm:$0xff]  ;;  %v142_v40 = vld [vmem:[#allocation2 + $0x48] sm:$0xff]  ;;  %v143_v42 = vld [vmem:[#allocation2 + $0x50] sm:$0xff] }
  0x1c   :  { %367 = vmatpush3.bf16.msra.mxu1 %v366_v18  ;;  %v375_v41 = vpack.c.bf16 %v142_v40, %v141_v39  ;;  %v144_v43 = vld [vmem:[#allocation2 + $0x58] sm:$0xff]  ;;  %v145_v45 = vld [vmem:[#allocation2 + $0x60] sm:$0xff]  ;;  %v146_v46 = vld [vmem:[#allocation2 + $0x68] sm:$0xff] }
  0x1d   :  { %368 = vmatprep.subr.bf16.mxu1 %v421_v0  ;;  %v378_v44 = vpack.c.bf16 %v144_v43, %v143_v42  ;;  %v381_v47 = vpack.c.bf16 %v146_v46, %v145_v45  ;;  %v147_v48 = vld [vmem:[#allocation2 + $0x70] sm:$0xff]  ;;  %v148_v49 = vld [vmem:[#allocation2 + $0x78] sm:$0xff]  ;;  %v232_v51 = vld [vmem:[%s544_s2] ss:$0 sm:$0xff] }
  0x1e   :  { %346 = vmatpush3.bf16.msra.mxu0 %v345_v14  ;;  %v384_v50 = vpack.c.bf16 %v148_v49, %v147_v48  ;;  %v233_v60 = vld [vmem:[%s546_s4] ss:$0 sm:$0xff] }
  0x1f   :  { %347 = vmatprep.subr.bf16.mxu0 %v421_v0 }
  0x20   :  { %370 = vmatpush3.bf16.msra.mxu1 %v369_v24 }
  0x21   :  { %371 = vmatprep.subr.bf16.mxu1 %v421_v0 }
  0x22   :  { %349 = vmatpush3.bf16.msra.mxu0 %v348_v21 }
  0x23   :  { %350 = vmatprep.subr.bf16.mxu0 %v421_v0 }
  0x24   :  { %373 = vmatpush3.bf16.msra.mxu1 %v372_v38 }
  0x25   :  { %374 = vmatprep.subr.bf16.mxu1 %v421_v0 }
  0x26   :  { %352 = vmatpush3.bf16.msra.mxu0 %v351_v25 }
  0x27   :  { %353 = vmatprep.subr.bf16.mxu0 %v421_v0 }
  0x28   :  { %376 = vmatpush3.bf16.msra.mxu1 %v375_v41 }
  0x29   :  { %377 = vmatprep.subr.bf16.mxu1 %v421_v0 }
  0x2a   :  { %355 = vmatpush3.bf16.msra.mxu0 %v354_v28 }
  0x2b   :  { %356 = vmatprep.subr.bf16.mxu0 %v421_v0 }
  0x2c   :  { %379 = vmatpush3.bf16.msra.mxu1 %v378_v44 }
  0x2d   :  { %380 = vmatprep.subr.bf16.mxu1 %v421_v0 }
  0x2e   :  { %358 = vmatpush3.bf16.msra.mxu0 %v357_v31 }
  0x2f   :  { %359 = vmatprep.subr.bf16.mxu0 %v421_v0 }
  0x30   :  { %382 = vmatpush3.bf16.msra.mxu1 %v381_v47 }
  0x31   :  { %383 = vmatprep.subr.bf16.mxu1 %v421_v0 }
  0x32   :  { %361 = vmatpush3.bf16.msra.mxu0 %v360_v34 }
  0x34   :  { %385 = vmatpush3.bf16.msra.mxu1 %v384_v50 }
  0x35   :  { %301 = vmatmul.mubr.f32.vlgmr.msra.gmra.mrb[0].mxu0 %v34_v35 }
 0x108   :  { %v124_v52 = vpop.f32.mrb[0].mxu0 }
 0x109   :  { %v125_v53 = vadd.f32 %v232_v51, %v124_v52  ;;  %v302_v54 = vpop.f32.mrb[1].mxu0 }
 0x10b   :  { %v129_v55 = vmul.f32 0.70710677, %v125_v53  ;;  %v128_v57 = vmul.f32 0.5, %v125_v53 }
 0x10d   :  { %392 = verf.f32 %v129_v55 }
 0x117   :  { %v393_v56 = vpop.eup %392 }
 0x118   :  { %v131_v58 = vadd.f32 1.0, %v393_v56 }
 0x11a   :  { %v132_v59 = vmul.f32 %v131_v58, %v128_v57 }
 0x11c   :  { %336 = vmatmul.mubr.f32.vlgmr.msra.gmra.mrb[0].mxu1 %v132_v59 }
 0x1ef   :  { %v222_v61 = vpop.f32.mrb[0].mxu1 }
 0x1f0   :  { %v223_v62 = vadd.f32 %v233_v60, %v222_v61  ;;  %v337_v63 = vpop.f32.mrb[1].mxu1 }
 0x1f2   :  { %226 = vst [vmem:[%s547_s5] sm:$0xff] %v223_v62 }
 0x1f3   :  { %231 = vsyncpa [#allocation3], 1 }

// kernel: contextualizer_block.5
= control target key start
LH: loop header
LB: loop body
LE: loop exit
PB: predicated region body
PF: predicated region fallthrough
CT: control target
= control target key end

     0   :  { %s998_s27 = smov 0   ;;  %s1000_s28 = smov 0   ;;  %s1168_s0 = inlined_call_operand.vmem [shape: f32[16,128], index: 0, kind: input, shape index: {}]   ;;  %s1169_s1 = inlined_call_operand.vmem [shape: f32[16,128], index: 1, kind: input, shape index: {}]   ;;  %s1170_s2 = inlined_call_operand.vmem [shape: f32[1,128], index: 2, kind: input, shape index: {}]   ;;  %s1171_s3 = inlined_call_operand.vmem [shape: f32[1,128], index: 3, kind: input, shape index: {}]   ;;  %s1172_s4 = inlined_call_operand.vmem [shape: f32[128,128], index: 4, kind: input, shape index: {}]   ;;  %s1173_s5 = inlined_call_operand.vmem [shape: f32[1,128], index: 5, kind: input, shape index: {}]   ;;  %s1174_s6 = inlined_call_operand.vmem [shape: f32[128,128], index: 6, kind: input, shape index: {}]   ;;  %s1175_s7 = inlined_call_operand.vmem [shape: f32[1,128], index: 7, kind: input, shape index: {}]   ;;  %s1176_s8 = inlined_call_operand.vmem [shape: f32[16,128], index: 8, kind: output, shape index: {}]  }
   0x1   :  { %s1002_s29 = smov 0  }
   0x2 LB: > { %s30_s30 = sadd.s32 1, %s944_s28  ;;  %p733_p0 = scmp.ge.s32.totalorder %s948_s29, 1  ;;  %s948_s29 = sphi %s1002_s29, %s18_s29   ;;  %s944_s28 = sphi %s1000_s28, %s1178_s28   ;;  %s940_s27 = sphi %s998_s27, %s1177_s27  }
   0x3   : > { %p32_p1 = scmp.ge.s32.totalorder %s30_s30, 2  ;;  %p310_p2 = scmp.lt.s32.totalorder %s948_s29, 3 }
   0x5   : > { %s1180_s30 = smov (%p32_p1, %s30_s30), 0  ;;  %p311_p3 = pnand %p733_p0, %p310_p2 }
   0x6   : > { %p358_p4 = scmp.lt.s32.totalorder (!%p311_p3), %s940_s27, 1  ;;  %v417_v3 = vld [vmem:[%s1172_s4] sm:$0xff] (!%p311_p3)  ;;  %v418_v4 = vld [vmem:[%s1172_s4 + $0x8] sm:$0xff] (!%p311_p3)  ;;  %v419_v5 = vld [vmem:[%s1172_s4 + $0x10] sm:$0xff] (!%p311_p3)  ;;  %v950_v6 = vmov (!%p311_p3), 0.0|0.0   ;;  %v389_v13 = vlaneseq (!%p311_p3)  ;;  %vm951_vm1 = vmmov (!%p311_p3), 0  }
   0x7   : > { %314 = sbr.rel (%p311_p3) target bundleno = 781 (0x30d), region = 52  ;;  %847 = vmatprep.subr.bf16.mxu0 (!%p311_p3), %v950_v6  ;;  %v848_v7 = vpack.c.bf16 (!%p311_p3), %v418_v4, %v417_v3  ;;  %v420_v8 = vld [vmem:[%s1172_s4 + $0x18] sm:$0xff] (!%p311_p3)  ;;  %871 = vmatprep.subr.bf16.mxu1 (!%p311_p3), %v950_v6  ;;  %v421_v10 = vld [vmem:[%s1172_s4 + $0x20] sm:$0xff] (!%p311_p3)  ;;  %v422_v11 = vld [vmem:[%s1172_s4 + $0x28] sm:$0xff] (!%p311_p3)  ;;  %v952_v28 = vmov (!%p311_p3), 0.0  }
   0x8   : > { %v851_v9 = vpack.c.bf16 (!%p311_p3), %v420_v8, %v419_v5  ;;  %v854_v12 = vpack.c.bf16 (!%p311_p3), %v422_v11, %v421_v10  ;;  %v390_v14 = vand.u32 (!%p311_p3), 127, %v389_v13  ;;  %v423_v20 = vld [vmem:[%s1172_s4 + $0x30] sm:$0xff] (!%p311_p3)  ;;  %v424_v21 = vld [vmem:[%s1172_s4 + $0x38] sm:$0xff] (!%p311_p3)  ;;  %v425_v23 = vld [vmem:[%s1172_s4 + $0x40] sm:$0xff] (!%p311_p3)  ;;  %809 = vmatprep.mubr.msk.f32.mxu0 (!%p311_p3), %vm951_vm1, %v952_v28  ;;  %844 = vmatprep.mubr.msk.f32.mxu1 (!%p311_p3), %vm951_vm1, %v952_v28 }
   0x9   : > { %849 = vmatpush3.bf16.msra.mxu0 (!%p311_p3), %v848_v7  ;;  %v857_v22 = vpack.c.bf16 (!%p311_p3), %v424_v21, %v423_v20  ;;  %v426_v24 = vld [vmem:[%s1172_s4 + $0x48] sm:$0xff] (!%p311_p3)  ;;  %v427_v26 = vld [vmem:[%s1172_s4 + $0x50] sm:$0xff] (!%p311_p3)  ;;  %v428_v27 = vld [vmem:[%s1172_s4 + $0x58] sm:$0xff] (!%p311_p3) }
   0xa   : > { %850 = vmatprep.subr.bf16.mxu0 (!%p311_p3), %v950_v6  ;;  %vm391_vm0 = vcmp.lt.s32.totalorder (!%p311_p3), %v390_v14, 32  ;;  %v860_v25 = vpack.c.bf16 (!%p311_p3), %v426_v24, %v425_v23  ;;  %v863_v29 = vpack.c.bf16 (!%p311_p3), %v428_v27, %v427_v26  ;;  %v429_v30 = vld [vmem:[%s1172_s4 + $0x60] sm:$0xff] (!%p311_p3)  ;;  %v430_v31 = vld [vmem:[%s1172_s4 + $0x68] sm:$0xff] (!%p311_p3)  ;;  %v431_v33 = vld [vmem:[%s1172_s4 + $0x70] sm:$0xff] (!%p311_p3) }
   0xb   : > { %v866_v32 = vpack.c.bf16 (!%p311_p3), %v430_v31, %v429_v30  ;;  %v432_v34 = vld [vmem:[%s1172_s4 + $0x78] sm:$0xff] (!%p311_p3)  ;;  %v515_v36 = vld [vmem:[%s1174_s6] sm:$0xff] (!%p311_p3)  ;;  %v516_v37 = vld [vmem:[%s1174_s6 + $0x8] sm:$0xff] (!%p311_p3) }
   0xc   : > { %v869_v35 = vpack.c.bf16 (!%p311_p3), %v432_v34, %v431_v33  ;;  %v517_v38 = vld [vmem:[%s1174_s6 + $0x10] sm:$0xff] (!%p311_p3)  ;;  %v872_v39 = vpack.c.bf16 (!%p311_p3), %v516_v37, %v515_v36  ;;  %v518_v40 = vld [vmem:[%s1174_s6 + $0x18] sm:$0xff] (!%p311_p3)  ;;  %v519_v42 = vld [vmem:[%s1174_s6 + $0x20] sm:$0xff] (!%p311_p3) }
   0xd   : > { %852 = vmatpush3.bf16.msra.mxu0 (!%p311_p3), %v851_v9  ;;  %v875_v41 = vpack.c.bf16 (!%p311_p3), %v518_v40, %v517_v38  ;;  %v520_v43 = vld [vmem:[%s1174_s6 + $0x28] sm:$0xff] (!%p311_p3)  ;;  %v737_v49 = vld [vmem:[%s1170_s2] ss:$0 sm:$0xff] (!%p311_p3)  ;;  %v521_v54 = vld [vmem:[%s1174_s6 + $0x30] sm:$0xff] (!%p311_p3) }
   0xe   : > { %s1182_s27 = smov (!%p358_p4, %s940_s27), 1  ;;  %853 = vmatprep.subr.bf16.mxu0 %v950_v6  ;;  %873 = vmatpush3.bf16.msra.mxu1 %v872_v39  ;;  %v878_v44 = vpack.c.bf16 %v520_v43, %v519_v42  ;;  %v738_v51 = vld [vmem:[%s1171_s3] ss:$0 sm:$0xff]  ;;  %v522_v55 = vld [vmem:[%s1174_s6 + $0x38] sm:$0xff]  ;;  %v524_v58 = vld [vmem:[%s1174_s6 + $0x48] sm:$0xff] }
   0xf   : > { %s1016_s9 = sshll.u32 %s1182_s27, 3  ;;  %874 = vmatprep.subr.bf16.mxu1 %v950_v6  ;;  %v881_v56 = vpack.c.bf16 %v522_v55, %v521_v54  ;;  %v523_v57 = vld [vmem:[%s1174_s6 + $0x40] sm:$0xff]  ;;  %v525_v60 = vld [vmem:[%s1174_s6 + $0x50] sm:$0xff]  ;;  %v526_v61 = vld [vmem:[%s1174_s6 + $0x58] sm:$0xff] }
  0x10   : > { %s361_s12 = scalar_lea.vmem %s1168_s0, %s1016_s9  ;;  %s365_s15 = scalar_lea.vmem %s1169_s1, %s1016_s9  ;;  %v884_v59 = vpack.c.bf16 %v524_v58, %v523_v57  ;;  %v887_v62 = vpack.c.bf16 %v526_v61, %v525_v60  ;;  %v527_v63 = vld [vmem:[%s1174_s6 + $0x60] sm:$0xff]  ;;  %v529_v3 = vld [vmem:[%s1174_s6 + $0x70] sm:$0xff]  ;;  %v530_v4 = vld [vmem:[%s1174_s6 + $0x78] sm:$0xff] }
  0x11   : > { %v383_v0 = vld [vmem:[%s361_s12] sm:$0xff]  ;;  %855 = vmatpush3.bf16.msra.mxu0 %v854_v12  ;;  %v893_v5 = vpack.c.bf16 %v530_v4, %v529_v3  ;;  %s382_s18 = scalar_lea.vmem %s1176_s8, %s1016_s9 }
  0x12   : > { %v384_v1 = vld [vmem:[%s365_s15] sm:$0xff]  ;;  %856 = vmatprep.subr.bf16.mxu0 %v950_v6  ;;  %876 = vmatpush3.bf16.msra.mxu1 %v875_v41 }
  0x13   : > { %v1026_v2 = vadd.f32 %v384_v1, %v383_v0  ;;  %877 = vmatprep.subr.bf16.mxu1 %v950_v6  ;;  %v528_v0 = vld [vmem:[%s1174_s6 + $0x68] sm:$0xff]  ;;  %v739_v7 = vld [vmem:[%s1173_s5] ss:$0 sm:$0xff] }
  0x14   : > { %v890_v1 = vpack.c.bf16 %v528_v0, %v527_v63 }
  0x15   : > { %386 = vadd.xlane.f32.xlu0 %v1026_v2  ;;  %858 = vmatpush3.bf16.msra.mxu0 %v857_v22 }
  0x16   : > { %859 = vmatprep.subr.bf16.mxu0 %v950_v6  ;;  %879 = vmatpush3.bf16.msra.mxu1 %v878_v44 }
  0x17   : > { %880 = vmatprep.subr.bf16.mxu1 %v950_v6 }
  0x19   : > { %861 = vmatpush3.bf16.msra.mxu0 %v860_v25 }
  0x1a   : > { %862 = vmatprep.subr.bf16.mxu0 %v950_v6  ;;  %882 = vmatpush3.bf16.msra.mxu1 %v881_v56 }
  0x1b   : > { %883 = vmatprep.subr.bf16.mxu1 %v950_v6 }
  0x1d   : > { %864 = vmatpush3.bf16.msra.mxu0 %v863_v29 }
  0x1e   : > { %865 = vmatprep.subr.bf16.mxu0 %v950_v6  ;;  %885 = vmatpush3.bf16.msra.mxu1 %v884_v59 }
  0x1f   : > { %886 = vmatprep.subr.bf16.mxu1 %v950_v6 }
  0x21   : > { %867 = vmatpush3.bf16.msra.mxu0 %v866_v32 }
  0x22   : > { %868 = vmatprep.subr.bf16.mxu0 %v950_v6  ;;  %888 = vmatpush3.bf16.msra.mxu1 %v887_v62 }
  0x23   : > { %889 = vmatprep.subr.bf16.mxu1 %v950_v6 }
  0x25   : > { %870 = vmatpush3.bf16.msra.mxu0 %v869_v35 }
  0x26   : > { %891 = vmatpush3.bf16.msra.mxu1 %v890_v1 }
  0x27   : > { %892 = vmatprep.subr.bf16.mxu1 %v950_v6 }
  0x2a   : > { %894 = vmatpush3.bf16.msra.mxu1 %v893_v5 }
  0xa2   : > { %v387_v15 = vpop.xlane.xlu0 %386 }
  0xa3   : > { %v388_v16 = vmul.f32 0.03125, %v387_v15  ;;  %v740_v15 = vld [vmem:[%s1175_s7] ss:$0 sm:$0xff] }
  0xa5   : > { %v392_v17 = vsub.f32 %v1026_v2, %v388_v16 }
  0xa7   : > { %v393_v18 = vsel %vm391_vm0, %v392_v17, 0.0 }
  0xa8   : > { %v394_v19 = vmul.f32 %v393_v18, %v393_v18 }
  0xaa   : > { %395 = vadd.xlane.f32.xlu0 %v394_v19 }
 0x137   : > { %v396_v45 = vpop.xlane.xlu0 %395 }
 0x138   : > { %v397_v46 = vmul.f32 0.03125, %v396_v45 }
 0x13a   : > { %v398_v47 = vadd.f32 1e-05, %v397_v46 }
 0x13c   : > { %922 = vrsqrt.f32 %v398_v47 }
 0x146   : > { %v923_v48 = vpop.eup %922 }
 0x147   : > { %v400_v50 = vmul.f32 %v923_v48, %v392_v17 }
 0x149   : > { %v408_v52 = vmul.f32 %v737_v49, %v400_v50 }
 0x14b   : > { %v416_v53 = vadd.f32 %v738_v51, %v408_v52 }
 0x14d   : > { %810 = vmatmul.mubr.f32.vlgmr.msra.gmra.mrb[0].mxu0 %v416_v53 }
 0x220   : > { %v506_v8 = vpop.f32.mrb[0].mxu0 }
 0x221   : > { %v507_v9 = vadd.f32 %v739_v7, %v506_v8  ;;  %v811_v10 = vpop.f32.mrb[1].mxu0 }
 0x223   : > { %v511_v11 = vmul.f32 0.70710677, %v507_v9  ;;  %v510_v12 = vmul.f32 0.5, %v507_v9 }
 0x225   : > { %924 = verf.f32 %v511_v11 }
 0x22f   : > { %v925_v6 = vpop.eup %924 }
 0x230   : > { %v513_v13 = vadd.f32 1.0, %v925_v6 }
 0x232   : > { %v514_v14 = vmul.f32 %v513_v13, %v510_v12 }
 0x234   : > { %845 = vmatmul.mubr.f32.vlgmr.msra.gmra.mrb[0].mxu1 %v514_v14 }
 0x307   : > { %v604_v16 = vpop.f32.mrb[0].mxu1 }
 0x308   : > { %v605_v17 = vadd.f32 %v740_v15, %v604_v16  ;;  %v846_v18 = vpop.f32.mrb[1].mxu1 }
 0x30a   : > { %v608_v19 = vadd.f32 %v605_v17, %v1026_v2 }
 0x30c   : > { %609 = vst [vmem:[%s382_s18] sm:$0xff] %v608_v19 }
 0x30d PF: > { %s18_s29 = sadd.s32 1, %s948_s29   ;;  %s1177_s27 = smov %s944_s28 }
 0x30e   : > { %p15_p5 = scmp.ge.s32.totalorder %s18_s29, 4   ;;  %s1178_s28 = smov %s1180_s30 }
 0x310   :  { %17 = sbr.rel (!%p15_p5) target bundleno = 2 (0x2), region = 94 }

</bundles_post_ra>
